<compile_context>
chip_gen: v6e
topology: v6e:2x2x1
jax: 0.10.0
libtpu: 0.0.40
codegen_flags: <defaults>
</compile_context>

<pallas_src>
import functools

import jax
import jax.numpy as jnp
from jax.experimental import pallas as pl
from jax.experimental.pallas import tpu as pltpu


def _conv1x1_bn_relu_kernel(x_ref, w_ref, gamma_ref, beta_ref, o_ref, *,
                            inv_p, eps):
    # x_ref:     [Cin,  P]   f32  (cast to bf16 in-kernel for the MXU)
    # w_ref:     [Cout, Cin] f32
    # gamma_ref: [Cout, 1]   f32
    # beta_ref:  [Cout, 1]   f32
    # o_ref:     [Cout, P]   f32
    x = x_ref[...].astype(jnp.bfloat16)
    w = w_ref[...].astype(jnp.bfloat16)

    # 1x1 conv == matmul on the MXU (bf16 operands, f32 accumulation).
    y = jnp.dot(w, x, preferred_element_type=jnp.float32)        # [Cout, P]

    # Training-mode batch statistics over the batch*spatial axis.
    # Mean-shifted (two-pass-in-VMEM) biased variance: numerically stable and
    # free under the DMA/launch bound since y is fully resident.
    mean = jnp.sum(y, axis=-1, keepdims=True) * inv_p             # [Cout, 1]
    centered = y - mean
    var = jnp.sum(centered * centered, axis=-1, keepdims=True) * inv_p

    # Fold BN into a per-channel affine on the centered activations, then ReLU.
    scale = jax.lax.rsqrt(var + eps) * gamma_ref[...]             # [Cout, 1]
    o_ref[...] = jnp.maximum(centered * scale + beta_ref[...], 0.0).astype(
        o_ref.dtype)


def conv1x1_bn_relu(x_nchw, w, gamma, beta, eps=1e-3):
    """x_nchw: [N, Cin, H, W], w: [Cout, Cin], gamma/beta: [Cout] -> [N, Cout, H, W]."""
    N, Cin, H, W = x_nchw.shape
    Cout = w.shape[0]
    P = N * H * W

    # NCHW -> [Cin, P].  For N == 1 (the module's case) this is a pure reshape.
    if N == 1:
        x_flat = x_nchw.reshape(Cin, P)
    else:
        # TODO(synk): if N>1 ever becomes hot, fold N into the kernel (grid axis
        # or 3-D block) instead of paying this extra HBM transpose.
        x_flat = jnp.transpose(x_nchw, (1, 0, 2, 3)).reshape(Cin, P)

    x_flat = x_flat.astype(jnp.float32)
    w_f = w.astype(jnp.float32)
    gamma2 = gamma.reshape(Cout, 1).astype(jnp.float32)
    beta2 = beta.reshape(Cout, 1).astype(jnp.float32)

    kernel = functools.partial(_conv1x1_bn_relu_kernel,
                               inv_p=1.0 / float(P), eps=float(eps))

    flops = 2 * Cout * Cin * P + 6 * Cout * P
    bytes_accessed = 4 * (Cin * P + Cout * Cin + 2 * Cout + Cout * P)

    y_flat = pl.pallas_call(
        kernel,
        out_shape=jax.ShapeDtypeStruct((Cout, P), jnp.float32),
        grid_spec=pltpu.PrefetchScalarGridSpec(
            num_scalar_prefetch=0,
            grid=(1,),  # single step: whole problem in one VMEM-resident block
            in_specs=[
                pl.BlockSpec((Cin, P), lambda i: (0, 0)),
                pl.BlockSpec((Cout, Cin), lambda i: (0, 0)),
                pl.BlockSpec((Cout, 1), lambda i: (0, 0)),
                pl.BlockSpec((Cout, 1), lambda i: (0, 0)),
            ],
            out_specs=pl.BlockSpec((Cout, P), lambda i: (0, 0)),
        ),
        compiler_params=pltpu.CompilerParams(
            dimension_semantics=("arbitrary",)),
        cost_estimate=pl.CostEstimate(flops=flops,
                                      transcendentals=Cout,
                                      bytes_accessed=bytes_accessed),
    )(x_flat, w_f, gamma2, beta2)

    # Back to NCHW (pure reshape for N == 1).
    if N == 1:
        return y_flat.reshape(1, Cout, H, W)
    return jnp.transpose(y_flat.reshape(Cout, N, H, W), (1, 0, 2, 3))


def _reference(x_nchw, w, gamma, beta, eps=1e-3):
    # pure-JAX f32 reference: conv1x1 + training-mode BN (batch stats, biased
    # variance) + relu.
    y = jnp.einsum("nchw,oc->nohw", x_nchw, w)
    mean = jnp.mean(y, axis=(0, 2, 3), keepdims=True)
    var = jnp.mean((y - mean) ** 2, axis=(0, 2, 3), keepdims=True)
    yhat = (y - mean) / jnp.sqrt(var + eps)
    yhat = yhat * gamma.reshape(1, -1, 1, 1) + beta.reshape(1, -1, 1, 1)
    return jnp.maximum(yhat, 0.0)


if __name__ == "__main__":
    key = jax.random.PRNGKey(0)
    kx, kw, kg, kb = jax.random.split(key, 4)

    # Shapes from the PyTorch module: Conv2d(480 -> 16, 1x1), input [1,480,14,14].
    N, Cin, H, W = 1, 480, 14, 14
    Cout = 16

    x = jax.random.normal(kx, (N, Cin, H, W), dtype=jnp.float32)
    w = jax.random.normal(kw, (Cout, Cin), dtype=jnp.float32) * 0.05
    gamma = 1.0 + 0.1 * jax.random.normal(kg, (Cout,), dtype=jnp.float32)
    beta = 0.1 * jax.random.normal(kb, (Cout,), dtype=jnp.float32)

    out = conv1x1_bn_relu(x, w, gamma, beta)
    jax.block_until_ready(out)
    assert out.shape == (N, Cout, H, W)

    # Primary check: against a reference fed the same bf16-quantized x/w
    # (isolates kernel logic from the intentional in-kernel bf16 MXU cast).
    xq = x.astype(jnp.bfloat16).astype(jnp.float32)
    wq = w.astype(jnp.bfloat16).astype(jnp.float32)
    ref_q = _reference(xq, wq, gamma, beta)
    assert jnp.allclose(out, ref_q, atol=1e-3, rtol=1e-3)

    # Secondary sanity check: against the full-f32 reference (looser tolerance
    # accounts for the bf16 MXU-operand quantization).
    ref_f32 = _reference(x, w, gamma, beta)
    assert jnp.allclose(out, ref_f32, atol=5e-2, rtol=5e-2)

    print("KERNEL_OK")
</pallas_src>

<mosaic_0001>
module attributes {stable_mosaic.version = 11 : i64} {
  func.func @_conv1x1_bn_relu_kernel(%arg0: i32, %arg1: memref<480x196xf32, #tpu.memory_space<vmem>>, %arg2: memref<16x480xf32, #tpu.memory_space<vmem>>, %arg3: memref<16x1xf32, #tpu.memory_space<vmem>>, %arg4: memref<16x1xf32, #tpu.memory_space<vmem>>, %arg5: memref<16x196xf32, #tpu.memory_space<vmem>>) attributes {dimension_semantics = [#tpu.dimension_semantics<arbitrary>], iteration_bounds = array<i64: 1>, scalar_prefetch = 0 : i64, scratch_operands = 0 : i64, tpu.core_type = #tpu.core_type<tc>, window_params = [{pipeline_mode = #tpu.pipeline_mode<synchronous>, transform_indices = @transform_0, window_bounds = array<i64: 480, 196>}, {pipeline_mode = #tpu.pipeline_mode<synchronous>, transform_indices = @transform_1, window_bounds = array<i64: 16, 480>}, {pipeline_mode = #tpu.pipeline_mode<synchronous>, transform_indices = @transform_2, window_bounds = array<i64: 16, 1>}, {pipeline_mode = #tpu.pipeline_mode<synchronous>, transform_indices = @transform_3, window_bounds = array<i64: 16, 1>}, {pipeline_mode = #tpu.pipeline_mode<synchronous>, transform_indices = @transform_4, window_bounds = array<i64: 16, 196>}]} {
    %c0 = arith.constant 0 : index
    %c0_0 = arith.constant 0 : index
    %0 = vector.load %arg1[%c0, %c0_0] : memref<480x196xf32, #tpu.memory_space<vmem>>, vector<480x196xf32>
    %1 = arith.truncf %0 : vector<480x196xf32> to vector<480x196xbf16>
    %c0_1 = arith.constant 0 : index
    %c0_2 = arith.constant 0 : index
    %2 = vector.load %arg2[%c0_1, %c0_2] : memref<16x480xf32, #tpu.memory_space<vmem>>, vector<16x480xf32>
    %3 = arith.truncf %2 : vector<16x480xf32> to vector<16x480xbf16>
    %cst = arith.constant dense<0.000000e+00> : vector<16x196xf32>
    %4 = tpu.matmul %3, %1, %cst {dimension_numbers = #tpu.dot_dimension_numbers<[1], [0], [0], [1], [0, 0, 1, 1], [], []>} : vector<16x480xbf16>, vector<480x196xbf16>, vector<16x196xf32> -> vector<16x196xf32>
    %cst_3 = arith.constant dense<0.000000e+00> : vector<16xf32>
    %5 = vector.multi_reduction <add>, %4, %cst_3 [1] : vector<16x196xf32> to vector<16xf32>
    %6 = vector.shape_cast %5 : vector<16xf32> to vector<16x1xf32>
    %cst_4 = arith.constant 0.00510204071 : f32
    %7 = vector.broadcast %cst_4 : f32 to vector<16x1xf32>
    %8 = arith.mulf %6, %7 : vector<16x1xf32>
    %9 = vector.broadcast %8 : vector<16x1xf32> to vector<16x196xf32>
    %10 = arith.subf %4, %9 : vector<16x196xf32>
    %11 = arith.mulf %10, %10 : vector<16x196xf32>
    %cst_5 = arith.constant dense<0.000000e+00> : vector<16xf32>
    %12 = vector.multi_reduction <add>, %11, %cst_5 [1] : vector<16x196xf32> to vector<16xf32>
    %13 = vector.shape_cast %12 : vector<16xf32> to vector<16x1xf32>
    %cst_6 = arith.constant 0.00510204071 : f32
    %14 = vector.broadcast %cst_6 : f32 to vector<16x1xf32>
    %15 = arith.mulf %13, %14 : vector<16x1xf32>
    %cst_7 = arith.constant 1.000000e-03 : f32
    %16 = vector.broadcast %cst_7 : f32 to vector<16x1xf32>
    %17 = arith.addf %15, %16 : vector<16x1xf32>
    %18 = math.rsqrt %17 : vector<16x1xf32>
    %c0_8 = arith.constant 0 : index
    %c0_9 = arith.constant 0 : index
    %19 = vector.load %arg3[%c0_8, %c0_9] : memref<16x1xf32, #tpu.memory_space<vmem>>, vector<16x1xf32>
    %20 = arith.mulf %18, %19 : vector<16x1xf32>
    %21 = vector.broadcast %20 : vector<16x1xf32> to vector<16x196xf32>
    %22 = arith.mulf %10, %21 : vector<16x196xf32>
    %c0_10 = arith.constant 0 : index
    %c0_11 = arith.constant 0 : index
    %23 = vector.load %arg4[%c0_10, %c0_11] : memref<16x1xf32, #tpu.memory_space<vmem>>, vector<16x1xf32>
    %24 = vector.broadcast %23 : vector<16x1xf32> to vector<16x196xf32>
    %25 = arith.addf %22, %24 : vector<16x196xf32>
    %cst_12 = arith.constant 0.000000e+00 : f32
    %26 = vector.broadcast %cst_12 : f32 to vector<16x196xf32>
    %27 = arith.maximumf %25, %26 : vector<16x196xf32>
    %c0_13 = arith.constant 0 : index
    %c0_14 = arith.constant 0 : index
    %28 = vector.load %arg5[%c0_13, %c0_14] : memref<16x196xf32, #tpu.memory_space<vmem>>, vector<16x196xf32>
    tpu.vector_store %arg5[%c0_13, %c0_14], %27 {strides = array<i32>} : memref<16x196xf32, #tpu.memory_space<vmem>>, vector<16x196xf32>,
    return
  }
  func.func @transform_0(%arg0: i32) -> (i32, i32) {
    %c0_i32 = arith.constant 0 : i32
    %c0_i32_0 = arith.constant 0 : i32
    %c0_i32_1 = arith.constant 0 : i32
    return %c0_i32, %c0_i32_0 : i32, i32
  }
  func.func @transform_1(%arg0: i32) -> (i32, i32) {
    %c0_i32 = arith.constant 0 : i32
    %c0_i32_0 = arith.constant 0 : i32
    %c0_i32_1 = arith.constant 0 : i32
    return %c0_i32, %c0_i32_0 : i32, i32
  }
  func.func @transform_2(%arg0: i32) -> (i32, i32) {
    %c0_i32 = arith.constant 0 : i32
    %c0_i32_0 = arith.constant 0 : i32
    %c0_i32_1 = arith.constant 0 : i32
    return %c0_i32, %c0_i32_0 : i32, i32
  }
  func.func @transform_3(%arg0: i32) -> (i32, i32) {
    %c0_i32 = arith.constant 0 : i32
    %c0_i32_0 = arith.constant 0 : i32
    %c0_i32_1 = arith.constant 0 : i32
    return %c0_i32, %c0_i32_0 : i32, i32
  }
  func.func @transform_4(%arg0: i32) -> (i32, i32) {
    %c0_i32 = arith.constant 0 : i32
    %c0_i32_0 = arith.constant 0 : i32
    %c0_i32_1 = arith.constant 0 : i32
    return %c0_i32, %c0_i32_0 : i32, i32
  }
}

</mosaic_0001>

<bundles_post_ra>
// kernel: tpu_custom_call.1
= control target key start
LH: loop header
LB: loop body
LE: loop exit
PB: predicated region body
PF: predicated region fallthrough
CT: control target
= control target key end

     0   :  { %vm211_vm0 = vcmask 785408   ;;  %s860_s0 = inlined_call_operand.vmem [shape: f32[480,196], index: 0, kind: input, shape index: {}]   ;;  %s861_s1 = inlined_call_operand.vmem [shape: f32[16,480], index: 1, kind: input, shape index: {}]   ;;  %s862_s2 = inlined_call_operand.vmem [shape: f32[16,1], index: 2, kind: input, shape index: {}]   ;;  %s863_s3 = inlined_call_operand.vmem [shape: f32[16,1], index: 3, kind: input, shape index: {}]   ;;  %s864_s4 = inlined_call_operand.hbm [shape: f32[16,196], index: 4, kind: output, shape index: {}]  }
   0x1   :  { %v48_v0 = vld [vmem:[%s860_s0 + $0xe8] sm:$0xff]  ;;  %v50_v1 = vld [vmem:[%s860_s0 + $0xf8] sm:$0xff]  ;;  %v47_v2 = vld [vmem:[%s860_s0 + $0xe0] sm:$0xff] }
   0x2   :  { %v154_v3 = vpack.c.bf16 %v50_v1, %v48_v0  ;;  %v49_v4 = vld [vmem:[%s860_s0 + $0xf0] sm:$0xff]  ;;  %v112_v5 = vld [vmem:[%s860_s0 + $0x2e8] sm:$0xff]  ;;  %v114_v6 = vld [vmem:[%s860_s0 + $0x2f8] sm:$0xff] }
   0x3   :  { %v153_v7 = vpack.c.bf16 %v49_v4, %v47_v2  ;;  %v186_v8 = vpack.c.bf16 %v114_v6, %v112_v5  ;;  %v111_v9 = vld [vmem:[%s860_s0 + $0x2e0] sm:$0xff]  ;;  %v113_v10 = vld [vmem:[%s860_s0 + $0x2f0] sm:$0xff]  ;;  %v44_v11 = vld [vmem:[%s860_s0 + $0xc8] sm:$0xff] }
   0x4   :  { %215 = vmatprep.subr.bf16.mxu0 %v154_v3  ;;  %v185_v12 = vpack.c.bf16 %v113_v10, %v111_v9  ;;  %v46_v13 = vld [vmem:[%s860_s0 + $0xd8] sm:$0xff]  ;;  %v43_v14 = vld [vmem:[%s860_s0 + $0xc0] sm:$0xff]  ;;  %v45_v15 = vld [vmem:[%s860_s0 + $0xd0] sm:$0xff] }
   0x5   :  { %216 = vmatpush1.bf16.msra.mxu0 %v153_v7  ;;  %258 = vmatprep.subr.bf16.mxu1 %v186_v8  ;;  %v152_v16 = vpack.c.bf16 %v46_v13, %v44_v11  ;;  %v151_v17 = vpack.c.bf16 %v45_v15, %v43_v14  ;;  %v108_v18 = vld [vmem:[%s860_s0 + $0x2c8] sm:$0xff]  ;;  %v110_v19 = vld [vmem:[%s860_s0 + $0x2d8] sm:$0xff]  ;;  %v107_v20 = vld [vmem:[%s860_s0 + $0x2c0] sm:$0xff] }
   0x6   :  { %259 = vmatpush1.bf16.msra.mxu1 %v185_v12  ;;  %v184_v21 = vpack.c.bf16 %v110_v19, %v108_v18  ;;  %v109_v22 = vld [vmem:[%s860_s0 + $0x2d0] sm:$0xff]  ;;  %v40_v23 = vld [vmem:[%s860_s0 + $0xa8] sm:$0xff]  ;;  %v42_v24 = vld [vmem:[%s860_s0 + $0xb8] sm:$0xff] }
   0x7   :  { %217 = vmatprep.subr.bf16.mxu0 %v152_v16  ;;  %v183_v25 = vpack.c.bf16 %v109_v22, %v107_v20  ;;  %v150_v26 = vpack.c.bf16 %v42_v24, %v40_v23  ;;  %v39_v27 = vld [vmem:[%s860_s0 + $0xa0] sm:$0xff]  ;;  %v41_v28 = vld [vmem:[%s860_s0 + $0xb0] sm:$0xff]  ;;  %v104_v29 = vld [vmem:[%s860_s0 + $0x2a8] sm:$0xff] }
   0x8   :  { %260 = vmatprep.subr.bf16.mxu1 %v184_v21  ;;  %v106_v30 = vld [vmem:[%s860_s0 + $0x2b8] sm:$0xff]  ;;  %v103_v31 = vld [vmem:[%s860_s0 + $0x2a0] sm:$0xff]  ;;  %v105_v32 = vld [vmem:[%s860_s0 + $0x2b0] sm:$0xff]  ;;  %v149_v33 = vpack.c.bf16 %v41_v28, %v39_v27 }
   0x9   :  { %218 = vmatpush1.bf16.msra.mxu0 %v151_v17  ;;  %v182_v34 = vpack.c.bf16 %v106_v30, %v104_v29  ;;  %v36_v35 = vld [vmem:[%s860_s0 + $0x88] sm:$0xff]  ;;  %v38_v36 = vld [vmem:[%s860_s0 + $0x98] sm:$0xff]  ;;  %v35_v37 = vld [vmem:[%s860_s0 + $0x80] sm:$0xff]  ;;  %v181_v38 = vpack.c.bf16 %v105_v32, %v103_v31 }
   0xa   :  { %261 = vmatpush1.bf16.msra.mxu1 %v183_v25  ;;  %219 = vmatprep.subr.bf16.mxu0 %v150_v26  ;;  %v148_v39 = vpack.c.bf16 %v38_v36, %v36_v35  ;;  %v37_v40 = vld [vmem:[%s860_s0 + $0x90] sm:$0xff]  ;;  %v100_v41 = vld [vmem:[%s860_s0 + $0x288] sm:$0xff]  ;;  %v102_v42 = vld [vmem:[%s860_s0 + $0x298] sm:$0xff] }
   0xb   :  { %262 = vmatprep.subr.bf16.mxu1 %v182_v34  ;;  %v180_v43 = vpack.c.bf16 %v102_v42, %v100_v41  ;;  %v99_v44 = vld [vmem:[%s860_s0 + $0x280] sm:$0xff]  ;;  %v101_v45 = vld [vmem:[%s860_s0 + $0x290] sm:$0xff]  ;;  %v32_v46 = vld [vmem:[%s860_s0 + $0x68] sm:$0xff]  ;;  %v147_v48 = vpack.c.bf16 %v37_v40, %v35_v37 }
   0xc   :  { %v34_v47 = vld [vmem:[%s860_s0 + $0x78] sm:$0xff]  ;;  %v96_v49 = vld [vmem:[%s860_s0 + $0x268] sm:$0xff]  ;;  %v179_v51 = vpack.c.bf16 %v101_v45, %v99_v44  ;;  %v31_v53 = vld [vmem:[%s860_s0 + $0x60] sm:$0xff] }
   0xd   :  { %220 = vmatpush1.bf16.msra.mxu0 %v149_v33  ;;  %v98_v50 = vld [vmem:[%s860_s0 + $0x278] sm:$0xff]  ;;  %v146_v52 = vpack.c.bf16 %v34_v47, %v32_v46  ;;  %v33_v54 = vld [vmem:[%s860_s0 + $0x70] sm:$0xff]  ;;  %v95_v55 = vld [vmem:[%s860_s0 + $0x260] sm:$0xff] }
   0xe   :  { %263 = vmatpush1.bf16.msra.mxu1 %v181_v38  ;;  %221 = vmatprep.subr.bf16.mxu0 %v148_v39  ;;  %v178_v56 = vpack.c.bf16 %v98_v50, %v96_v49  ;;  %v97_v57 = vld [vmem:[%s860_s0 + $0x270] sm:$0xff]  ;;  %v28_v58 = vld [vmem:[%s860_s0 + $0x48] sm:$0xff]  ;;  %v30_v59 = vld [vmem:[%s860_s0 + $0x58] sm:$0xff]  ;;  %v145_v62 = vpack.c.bf16 %v33_v54, %v31_v53 }
   0xf   :  { %264 = vmatprep.subr.bf16.mxu1 %v180_v43  ;;  %v92_v60 = vld [vmem:[%s860_s0 + $0x248] sm:$0xff]  ;;  %v94_v61 = vld [vmem:[%s860_s0 + $0x258] sm:$0xff]  ;;  %v177_v63 = vpack.c.bf16 %v97_v57, %v95_v55  ;;  %v144_v0 = vpack.c.bf16 %v30_v59, %v28_v58  ;;  %v27_v1 = vld [vmem:[%s860_s0 + $0x40] sm:$0xff] }
  0x10   :  { %v29_v2 = vld [vmem:[%s860_s0 + $0x50] sm:$0xff]  ;;  %v91_v3 = vld [vmem:[%s860_s0 + $0x240] sm:$0xff]  ;;  %v176_v4 = vpack.c.bf16 %v94_v61, %v92_v60  ;;  %v24_v6 = vld [vmem:[%s860_s0 + $0x28] sm:$0xff] }
  0x11   :  { %222 = vmatpush1.bf16.msra.mxu0 %v147_v48  ;;  %v93_v5 = vld [vmem:[%s860_s0 + $0x250] sm:$0xff]  ;;  %v26_v7 = vld [vmem:[%s860_s0 + $0x38] sm:$0xff]  ;;  %v88_v8 = vld [vmem:[%s860_s0 + $0x228] sm:$0xff]  ;;  %v143_v10 = vpack.c.bf16 %v29_v2, %v27_v1 }
  0x12   :  { %265 = vmatpush1.bf16.msra.mxu1 %v179_v51  ;;  %223 = vmatprep.subr.bf16.mxu0 %v146_v52  ;;  %v90_v9 = vld [vmem:[%s860_s0 + $0x238] sm:$0xff]  ;;  %v175_v11 = vpack.c.bf16 %v93_v5, %v91_v3  ;;  %v142_v12 = vpack.c.bf16 %v26_v7, %v24_v6  ;;  %v23_v13 = vld [vmem:[%s860_s0 + $0x20] sm:$0xff]  ;;  %v25_v14 = vld [vmem:[%s860_s0 + $0x30] sm:$0xff] }
  0x13   :  { %266 = vmatprep.subr.bf16.mxu1 %v178_v56  ;;  %v87_v15 = vld [vmem:[%s860_s0 + $0x220] sm:$0xff]  ;;  %v174_v16 = vpack.c.bf16 %v90_v9, %v88_v8  ;;  %v89_v17 = vld [vmem:[%s860_s0 + $0x230] sm:$0xff]  ;;  %v20_v18 = vld [vmem:[%s860_s0 + $0x8] sm:$0xff]  ;;  %v141_v22 = vpack.c.bf16 %v25_v14, %v23_v13 }
  0x14   :  { %v22_v19 = vld [vmem:[%s860_s0 + $0x18] sm:$0xff]  ;;  %v84_v20 = vld [vmem:[%s860_s0 + $0x208] sm:$0xff]  ;;  %v173_v23 = vpack.c.bf16 %v89_v17, %v87_v15  ;;  %v19_v25 = vld [vmem:[%s860_s0] sm:$0xff] }
  0x15   :  { %224 = vmatpush1.bf16.msra.mxu0 %v145_v62  ;;  %v86_v21 = vld [vmem:[%s860_s0 + $0x218] sm:$0xff]  ;;  %v140_v24 = vpack.c.bf16 %v22_v19, %v20_v18  ;;  %v21_v26 = vld [vmem:[%s860_s0 + $0x10] sm:$0xff]  ;;  %v83_v27 = vld [vmem:[%s860_s0 + $0x200] sm:$0xff] }
  0x16   :  { %267 = vmatpush1.bf16.msra.mxu1 %v177_v63  ;;  %225 = vmatprep.subr.bf16.mxu0 %v144_v0  ;;  %v172_v28 = vpack.c.bf16 %v86_v21, %v84_v20  ;;  %v85_v29 = vld [vmem:[%s860_s0 + $0x210] sm:$0xff]  ;;  %v80_v30 = vld [vmem:[%s860_s0 + $0x1e8] sm:$0xff]  ;;  %v82_v31 = vld [vmem:[%s860_s0 + $0x1f8] sm:$0xff]  ;;  %v139_v34 = vpack.c.bf16 %v21_v26, %v19_v25 }
  0x17   :  { %268 = vmatprep.subr.bf16.mxu1 %v176_v4  ;;  %v136_v32 = vld [vmem:[%s860_s0 + $0x3a8] sm:$0xff]  ;;  %v138_v33 = vld [vmem:[%s860_s0 + $0x3b8] sm:$0xff]  ;;  %v171_v35 = vpack.c.bf16 %v85_v29, %v83_v27  ;;  %v170_v36 = vpack.c.bf16 %v82_v31, %v80_v30  ;;  %v79_v37 = vld [vmem:[%s860_s0 + $0x1e0] sm:$0xff] }
  0x18   :  { %v81_v38 = vld [vmem:[%s860_s0 + $0x1f0] sm:$0xff]  ;;  %v135_v39 = vld [vmem:[%s860_s0 + $0x3a0] sm:$0xff]  ;;  %v198_v40 = vpack.c.bf16 %v138_v33, %v136_v32  ;;  %v76_v42 = vld [vmem:[%s860_s0 + $0x1c8] sm:$0xff] }
  0x19   :  { %226 = vmatpush1.bf16.msra.mxu0 %v143_v10  ;;  %v137_v41 = vld [vmem:[%s860_s0 + $0x3b0] sm:$0xff]  ;;  %v78_v43 = vld [vmem:[%s860_s0 + $0x1d8] sm:$0xff]  ;;  %v132_v44 = vld [vmem:[%s860_s0 + $0x388] sm:$0xff]  ;;  %v169_v46 = vpack.c.bf16 %v81_v38, %v79_v37 }
  0x1a   :  { %269 = vmatpush1.bf16.msra.mxu1 %v175_v11  ;;  %227 = vmatprep.subr.bf16.mxu0 %v142_v12  ;;  %v134_v45 = vld [vmem:[%s860_s0 + $0x398] sm:$0xff]  ;;  %v197_v47 = vpack.c.bf16 %v137_v41, %v135_v39  ;;  %v168_v48 = vpack.c.bf16 %v78_v43, %v76_v42  ;;  %v75_v49 = vld [vmem:[%s860_s0 + $0x1c0] sm:$0xff]  ;;  %v77_v50 = vld [vmem:[%s860_s0 + $0x1d0] sm:$0xff] }
  0x1b   :  { %270 = vmatprep.subr.bf16.mxu1 %v174_v16  ;;  %v131_v51 = vld [vmem:[%s860_s0 + $0x380] sm:$0xff]  ;;  %v196_v52 = vpack.c.bf16 %v134_v45, %v132_v44  ;;  %v133_v53 = vld [vmem:[%s860_s0 + $0x390] sm:$0xff]  ;;  %v72_v54 = vld [vmem:[%s860_s0 + $0x1a8] sm:$0xff]  ;;  %v167_v58 = vpack.c.bf16 %v77_v50, %v75_v49 }
  0x1c   :  { %v74_v55 = vld [vmem:[%s860_s0 + $0x1b8] sm:$0xff]  ;;  %v128_v56 = vld [vmem:[%s860_s0 + $0x368] sm:$0xff]  ;;  %v71_v59 = vld [vmem:[%s860_s0 + $0x1a0] sm:$0xff]  ;;  %v195_v60 = vpack.c.bf16 %v133_v53, %v131_v51 }
  0x1d   :  { %228 = vmatpush1.bf16.msra.mxu0 %v141_v22  ;;  %v130_v57 = vld [vmem:[%s860_s0 + $0x378] sm:$0xff]  ;;  %v166_v61 = vpack.c.bf16 %v74_v55, %v72_v54  ;;  %v73_v62 = vld [vmem:[%s860_s0 + $0x1b0] sm:$0xff]  ;;  %v127_v63 = vld [vmem:[%s860_s0 + $0x360] sm:$0xff] }
  0x1e   :  { %271 = vmatpush1.bf16.msra.mxu1 %v173_v23  ;;  %229 = vmatprep.subr.bf16.mxu0 %v140_v24  ;;  %v129_v0 = vld [vmem:[%s860_s0 + $0x370] sm:$0xff]  ;;  %v194_v1 = vpack.c.bf16 %v130_v57, %v128_v56  ;;  %v68_v2 = vld [vmem:[%s860_s0 + $0x188] sm:$0xff]  ;;  %v70_v3 = vld [vmem:[%s860_s0 + $0x198] sm:$0xff]  ;;  %v165_v8 = vpack.c.bf16 %v73_v62, %v71_v59 }
  0x1f   :  { %272 = vmatprep.subr.bf16.mxu1 %v172_v28  ;;  %v202_v4 = vld [vmem:[%s861_s1 + $0x18] sm:$0xff]  ;;  %v124_v5 = vld [vmem:[%s860_s0 + $0x348] sm:$0xff]  ;;  %v67_v9 = vld [vmem:[%s860_s0 + $0x180] sm:$0xff]  ;;  %v193_v13 = vpack.c.bf16 %v129_v0, %v127_v63  ;;  %v164_v14 = vpack.c.bf16 %v70_v3, %v68_v2 }
  0x20   :  { %v126_v6 = vld [vmem:[%s860_s0 + $0x358] sm:$0xff]  ;;  %v69_v10 = vld [vmem:[%s860_s0 + $0x190] sm:$0xff]  ;;  %v123_v11 = vld [vmem:[%s860_s0 + $0x340] sm:$0xff] }
  0x21   :  { %230 = vmatpush1.bf16.msra.mxu0 %v139_v34  ;;  %v206_v7 = vld [vmem:[%s861_s1 + $0x38] sm:$0xff]  ;;  %v125_v15 = vld [vmem:[%s860_s0 + $0x350] sm:$0xff]  ;;  %v200_v16 = vld [vmem:[%s861_s1 + $0x8] sm:$0xff]  ;;  %v192_v18 = vpack.c.bf16 %v126_v6, %v124_v5 }
  0x22   :  { %273 = vmatpush1.bf16.msra.mxu1 %v171_v35  ;;  %231 = vmatprep.subr.bf16.mxu0 %v170_v36  ;;  %v210_v12 = vpack.c.bf16 %v206_v7, %v202_v4  ;;  %v204_v17 = vld [vmem:[%s861_s1 + $0x28] sm:$0xff]  ;;  %v66_v20 = vld [vmem:[%s860_s0 + $0x178] sm:$0xff] }
  0x23   :  { %278 = vmatprep.subr.bf16.mxu1 %v198_v40  ;;  %v64_v19 = vld [vmem:[%s860_s0 + $0x168] sm:$0xff]  ;;  %v208_v21 = vpack.c.bf16 %v204_v17, %v200_v16 }
  0x24   :  { %392 = vmatprep.mubr.msk.bf16.mxu1 %vm211_vm0, %v210_v12 }
  0x25   :  { %232 = vmatpush2.bf16.msra.mxu0 %v169_v46 }
  0x26   :  { %279 = vmatpush2.bf16.msra.mxu1 %v197_v47  ;;  %233 = vmatprep.subr.bf16.mxu0 %v168_v48 }
  0x27   :  { %280 = vmatprep.subr.bf16.mxu1 %v196_v52 }
  0x29   :  { %234 = vmatpush2.bf16.msra.mxu0 %v167_v58 }
  0x2a   :  { %281 = vmatpush2.bf16.msra.mxu1 %v195_v60  ;;  %235 = vmatprep.subr.bf16.mxu0 %v166_v61 }
  0x2b   :  { %282 = vmatprep.subr.bf16.mxu1 %v194_v1 }
  0x2c   :  { %9 = vsyncpa [#allocation3], 0  ;;  %v120_v22 = vld [vmem:[%s860_s0 + $0x328] sm:$0xff]  ;;  %v122_v23 = vld [vmem:[%s860_s0 + $0x338] sm:$0xff]  ;;  %v163_v24 = vpack.c.bf16 %v69_v10, %v67_v9  ;;  %247 = vmatprep.mubr.bf16.mxu0 %v208_v21  ;;  %v191_v25 = vpack.c.bf16 %v125_v15, %v123_v11  ;;  %v162_v26 = vpack.c.bf16 %v66_v20, %v64_v19  ;;  %vm301_vm1 = vcmask 556032  }
  0x2d   :  { %236 = vmatpush2.bf16.msra.mxu0 %v165_v8  ;;  %v63_v27 = vld [vmem:[%s860_s0 + $0x160] sm:$0xff]  ;;  %v65_v28 = vld [vmem:[%s860_s0 + $0x170] sm:$0xff]  ;;  %v190_v30 = vpack.c.bf16 %v122_v23, %v120_v22  ;;  %v60_v32 = vld [vmem:[%s860_s0 + $0x148] sm:$0xff] }
  0x2e   :  { %283 = vmatpush2.bf16.msra.mxu1 %v193_v13  ;;  %237 = vmatprep.subr.bf16.mxu0 %v164_v14  ;;  %v119_v29 = vld [vmem:[%s860_s0 + $0x320] sm:$0xff]  ;;  %v121_v31 = vld [vmem:[%s860_s0 + $0x330] sm:$0xff]  ;;  %v62_v33 = vld [vmem:[%s860_s0 + $0x158] sm:$0xff]  ;;  %v161_v36 = vpack.c.bf16 %v65_v28, %v63_v27 }
  0x2f   :  { %284 = vmatprep.subr.bf16.mxu1 %v192_v18  ;;  %v116_v34 = vld [vmem:[%s860_s0 + $0x308] sm:$0xff]  ;;  %v118_v35 = vld [vmem:[%s860_s0 + $0x318] sm:$0xff]  ;;  %v189_v37 = vpack.c.bf16 %v121_v31, %v119_v29  ;;  %v160_v38 = vpack.c.bf16 %v62_v33, %v60_v32  ;;  %v59_v39 = vld [vmem:[%s860_s0 + $0x140] sm:$0xff]  ;;  %v425_v32 = vmov 0  }
  0x30   :  { %v61_v40 = vld [vmem:[%s860_s0 + $0x150] sm:$0xff]  ;;  %v115_v41 = vld [vmem:[%s860_s0 + $0x300] sm:$0xff]  ;;  %v188_v42 = vpack.c.bf16 %v118_v35, %v116_v34  ;;  %v56_v44 = vld [vmem:[%s860_s0 + $0x128] sm:$0xff]  ;;  %398 = vset.pattern.permute.xlu1 %v425_v32  ;;  %397 = vset.pattern.permute.xlu0 %v425_v32 }
  0x31   :  { %238 = vmatpush2.bf16.msra.mxu0 %v163_v24  ;;  %v117_v43 = vld [vmem:[%s860_s0 + $0x310] sm:$0xff]  ;;  %v58_v45 = vld [vmem:[%s860_s0 + $0x138] sm:$0xff]  ;;  %v159_v46 = vpack.c.bf16 %v61_v40, %v59_v39  ;;  %v55_v47 = vld [vmem:[%s860_s0 + $0x120] sm:$0xff] }
  0x32   :  { %285 = vmatpush2.bf16.msra.mxu1 %v191_v25  ;;  %239 = vmatprep.subr.bf16.mxu0 %v162_v26  ;;  %v187_v48 = vpack.c.bf16 %v117_v43, %v115_v41  ;;  %v158_v49 = vpack.c.bf16 %v58_v45, %v56_v44  ;;  %v57_v50 = vld [vmem:[%s860_s0 + $0x130] sm:$0xff]  ;;  %v52_v53 = vld [vmem:[%s860_s0 + $0x108] sm:$0xff]  ;;  %v54_v54 = vld [vmem:[%s860_s0 + $0x118] sm:$0xff] }
  0x33   :  { %286 = vmatprep.subr.bf16.mxu1 %v190_v30  ;;  %v201_v51 = vld [vmem:[%s861_s1 + $0x10] sm:$0xff]  ;;  %v157_v55 = vpack.c.bf16 %v57_v50, %v55_v47  ;;  %v156_v57 = vpack.c.bf16 %v54_v54, %v52_v53  ;;  %v51_v58 = vld [vmem:[%s860_s0 + $0x100] sm:$0xff]  ;;  %v335_v43 = vld [vmem:[%s862_s2 + $0x8] sm:$0xff] }
  0x34   :  { %v205_v52 = vld [vmem:[%s861_s1 + $0x30] sm:$0xff]  ;;  %v199_v61 = vld [vmem:[%s861_s1] sm:$0xff] }
  0x35   :  { %240 = vmatpush2.bf16.msra.mxu0 %v161_v36  ;;  %v209_v56 = vpack.c.bf16 %v205_v52, %v201_v51  ;;  %v53_v59 = vld [vmem:[%s860_s0 + $0x110] sm:$0xff]  ;;  %v203_v62 = vld [vmem:[%s861_s1 + $0x20] sm:$0xff] }
  0x36   :  { %287 = vmatpush2.bf16.msra.mxu1 %v189_v37  ;;  %241 = vmatprep.subr.bf16.mxu0 %v160_v38  ;;  %v155_v60 = vpack.c.bf16 %v53_v59, %v51_v58  ;;  %v207_v63 = vpack.c.bf16 %v203_v62, %v199_v61  ;;  %v352_v33 = vld [vmem:[%s863_s3] sm:$0xff] }
  0x37   :  { %288 = vmatprep.subr.bf16.mxu1 %v188_v42  ;;  %v334_v40 = vld [vmem:[%s862_s2] sm:$0xff]  ;;  %s426_s2 = smov [#allocation2]  }
  0x38   :  { %s381_s17 = sshll.u32 %s426_s2, 4  ;;  %s382_s17 = int_to_ptr.vmem [resolvable:$true] %s381_s17 }
  0x39   :  { %242 = vmatpush2.bf16.msra.mxu0 %v159_v46  ;;  %v353_v46 = vld [vmem:[%s863_s3 + $0x8] sm:$0xff]  ;;  %s403_s3 = scalar_lea.vmem %s382_s17, 512  ;;  %p408_p1 = scmp.lt.s32.totalorder %s382_s17, %s382_s17 }
  0x3a   :  { %289 = vmatpush2.bf16.msra.mxu1 %v187_v48  ;;  %243 = vmatprep.subr.bf16.mxu0 %v158_v49  ;;  %p404_p0 = scmp.ne.s32.totalorder %s382_s17, %s403_s3  ;;  %p409_p2 = scmp.lt.s32.totalorder %s403_s3, %s403_s3 }
  0x3c   :  { %p410_p3 = por %p409_p2, %p408_p1 }
  0x3d   :  { %244 = vmatpush2.bf16.msra.mxu0 %v157_v55  ;;  %291 = vmatmul.mubr.bf16.vlgmr.msra.gmra.mxu1 %v209_v56 }
  0x3e   :  { %245 = vmatprep.subr.bf16.mxu0 %v156_v57  ;;  %p411_p4 = pnand %p410_p3, %p404_p0 }
  0x41   :  { %246 = vmatpush2.bf16.msra.mxu0 %v155_v60 }
  0x44   :  { %248 = vmatmul.mubr.bf16.vlgmr.msra.gmra.mxu0 %v207_v63 }
  0xfd   :  { %v292_v0 = vpop.f32.mrf.mxu1 }
  0xff   :  { %v294_v1 = vpop.f32.mrf.mxu1 }
 0x101   :  { %v296_v3 = vpop.f32.mrf.mxu1 }
 0x103   :  { %v298_v9 = vpop.f32.mrf.mxu1 }
 0x104   :  { %v249_v2 = vpop.f32.mrf.mxu0 }
 0x105   :  { %v293_v6 = vadd.f32 %v292_v0, %v249_v2 }
 0x106   :  { %v251_v4 = vpop.f32.mrf.mxu0 }
 0x107   :  { %v295_v5 = vadd.f32 %v294_v1, %v251_v4 }
 0x108   :  { %v253_v7 = vpop.f32.mrf.mxu0 }
 0x109   :  { %v302_v8 = vsel %vm301_vm1, %v295_v5, 0.0  ;;  %v297_v13 = vadd.f32 %v296_v3, %v253_v7 }
 0x10a   :  { %v255_v10 = vpop.f32.mrf.mxu0  ;;  %v303_v11 = vadd.f32 %v302_v8, %v293_v6 }
 0x10b   :  { %v299_v12 = vadd.f32 %v298_v9, %v255_v10 }
 0x10c   :  { %304 = vadd.xlane.f32.xlu0 %v303_v11 }
 0x10d   :  { %v306_v14 = vsel %vm301_vm1, %v299_v12, 0.0 }
 0x10e   :  { %v307_v15 = vadd.f32 %v306_v14, %v297_v13 }
 0x110   :  { %308 = vadd.xlane.f32.xlu0 %v307_v15 }
 0x195   :  { %v305_v16 = vpop.xlane.xlu0 %304 }
 0x196   :  { %v310_v17 = vmul.f32 0.0051020407, %v305_v16 }
 0x198   :  { %v312_v18 = vsub.f32 %v293_v6, %v310_v17  ;;  %v313_v19 = vsub.f32 %v295_v5, %v310_v17 }
 0x199   :  { %v309_v20 = vpop.xlane.xlu0 %308 }
 0x19a   :  { %v311_v21 = vmul.f32 0.0051020407, %v309_v20  ;;  %v316_v22 = vmul.f32 %v312_v18, %v312_v18  ;;  %v317_v23 = vmul.f32 %v313_v19, %v313_v19 }
 0x19c   :  { %v314_v24 = vsub.f32 %v297_v13, %v311_v21  ;;  %v315_v25 = vsub.f32 %v299_v12, %v311_v21  ;;  %v320_v26 = vsel %vm301_vm1, %v317_v23, 0.0 }
 0x19d   :  { %v321_v27 = vadd.f32 %v320_v26, %v316_v22 }
 0x19e   :  { %v318_v28 = vmul.f32 %v314_v24, %v314_v24  ;;  %v319_v29 = vmul.f32 %v315_v25, %v315_v25 }
 0x19f   :  { %322 = vadd.xlane.f32.xlu1 %v321_v27 }
 0x1a0   :  { %v324_v30 = vsel %vm301_vm1, %v319_v29, 0.0 }
 0x1a1   :  { %v325_v31 = vadd.f32 %v324_v30, %v318_v28 }
 0x1a3   :  { %326 = vadd.xlane.f32.xlu1 %v325_v31 }
 0x1b4   :  { %356 = vperm.xlu1 %398, %v352_v33  }
 0x228   :  { %v323_v34 = vpop.xlane.xlu1 %322 }
 0x229   :  { %v328_v35 = vmul.f32 0.0051020407, %v323_v34 }
 0x22b   :  { %v330_v36 = vadd.f32 0.001, %v328_v35 }
 0x22c   :  { %v327_v37 = vpop.xlane.xlu1 %326 }
 0x22d   :  { %399 = vrsqrt.f32 %v330_v36  ;;  %v329_v38 = vmul.f32 0.0051020407, %v327_v37 }
 0x22f   :  { %v331_v39 = vadd.f32 0.001, %v329_v38 }
 0x230   :  { %v357_v47 = vpop.permute.xlu1 %356 }
 0x231   :  { %401 = vrsqrt.f32 %v331_v39 }
 0x23a   :  { %v400_v41 = vpop.eup %399 }
 0x23b   :  { %v336_v42 = vmul.f32 %v400_v41, %v334_v40 }
 0x23d   :  { %340 = vperm.xlu0 %397, %v336_v42  }
 0x23e   :  { %v402_v44 = vpop.eup %401 }
 0x23f   :  { %v337_v45 = vmul.f32 %v402_v44, %v335_v43 }
 0x241   :  { %345 = vperm.xlu1 %398, %v337_v45  }
 0x245   :  { %361 = vperm.xlu1 %398, %v353_v46  }
 0x2b8   :  { %v341_v48 = vpop.permute.xlu0 %340 }
 0x2b9   :  { %v348_v49 = vmul.f32 %v341_v48, %v312_v18  ;;  %v349_v50 = vmul.f32 %v341_v48, %v313_v19 }
 0x2bb   :  { %v364_v51 = vadd.f32 %v357_v47, %v348_v49  ;;  %v365_v52 = vadd.f32 %v357_v47, %v349_v50 }
 0x2bc   :  { %v346_v53 = vpop.permute.xlu1 %345 }
 0x2bd   :  { %v368_v54 = vmax.f32 %v364_v51, 0.0  ;;  %v369_v55 = vmax.f32 %v365_v52, 0.0  ;;  %v350_v56 = vmul.f32 %v346_v53, %v314_v24  ;;  %v351_v57 = vmul.f32 %v346_v53, %v315_v25 }
 0x2bf   :  { %372 = vst [vmem:[#allocation2] sm:$0xff] %v368_v54  ;;  %373 = vst.msk [vmem:[#allocation2 + $0x8] sm:$0xff] %vm301_vm1, %v369_v55 }
 0x2c0   :  { %v362_v58 = vpop.permute.xlu1 %361 }
 0x2c1   :  { %v366_v59 = vadd.f32 %v362_v58, %v350_v56  ;;  %v367_v60 = vadd.f32 %v362_v58, %v351_v57 }
 0x2c3   :  { %v370_v61 = vmax.f32 %v366_v59, 0.0  ;;  %v371_v62 = vmax.f32 %v367_v60, 0.0 }
 0x2c5   :  { %374 = vst [vmem:[#allocation2 + $0x10] sm:$0xff] %v370_v61  ;;  %375 = vst.msk [vmem:[#allocation2 + $0x18] sm:$0xff] %vm301_vm1, %v371_v62 }
 0x2c6   :  { %414 = shalt.err (!%p411_p4)
}
 0x2c7   :  { %s427_s18 = smov 256   ;;  %s428_s19 = smov 16  }
 0x2c8   :  { %387 = dma.vmem_to_hbm [thread:$0]  %s382_s17, 512, %s864_s4, [#allocation3], %s427_s18, %s427_s18, %s428_s19  }
 0x2c9   :  { %423 = dma.done.wait [#allocation3], 512  }
 0x2ca   :  { %424 = vsyncadd [#allocation3], 4294966784 }
 0x2cb   :  { %391 = vsyncpa [#allocation3], 1 }

</bundles_post_ra>
